<compile_context>
chip_gen: v7x
topology: tpu7x:2x2x1
jax: 0.10.0
libtpu: 0.0.40
codegen_flags: <defaults>
</compile_context>

<pallas_src>
import functools

import jax
import jax.numpy as jnp
from jax import lax
from jax.experimental import pallas as pl
from jax.experimental.pallas import tpu as pltpu


LANE = 128      # TPU lane width: pad feature (last) dims to multiples of this
SUBLANE = 8     # f32 sublane packing: pad batch dim to multiples of this
MAX_BT = 512    # batch tile (rows); big enough to amortize per-step overhead


def _round_up(x, m):
    return (x + m - 1) // m * m


# ----------------------------- Pallas kernel ------------------------------ #
def _odefunc_kernel(t_ref, y_ref, e_ref, c_ref,
                    w1yT_ref, w1cT_ref, w1t_ref, b1_ref, w2T_ref, b2_ref,
                    dy_ref, negdiv_ref, *, mxu_bf16):
    y = y_ref[...]          # [Bt, Dp]
    e = e_ref[...]          # [Bt, Dp]  Rademacher probe
    c = c_ref[...]          # [Bt, Dcp]
    t = t_ref[0]            # scalar (SMEM)

    cast = (lambda x: x.astype(jnp.bfloat16)) if mxu_bf16 else (lambda x: x)

    w1yT = cast(w1yT_ref[...])   # [Dp, Hp]
    w2T = cast(w2T_ref[...])     # [Hp, Dp]

    # Fold t into the first-layer bias (scalar-from-SMEM * vector, no [B,1]).
    bias_eff = t * w1t_ref[...] + b1_ref[...]                        # [1, Hp]

    # One MXU pass for both y @ W1y^T and e @ W1y^T.
    bt = y.shape[0]
    ye = jnp.concatenate([y, e], axis=0)                             # [2Bt, Dp]
    yew1 = jnp.dot(cast(ye), w1yT, preferred_element_type=jnp.float32)
    yw1 = yew1[:bt]                                                  # y @ W1y^T
    ew1 = yew1[bt:]                                                  # e @ W1y^T

    z = (yw1
         + jnp.dot(cast(c), cast(w1cT_ref[...]),
                   preferred_element_type=jnp.float32)
         + bias_eff)                                                 # [Bt, Hp]
    h = jnp.tanh(z)                                                  # f32 (EUP)

    dy = jnp.dot(cast(h), w2T, preferred_element_type=jnp.float32) \
         + b2_ref[...]                                               # [Bt, Dp]
    dy_ref[...] = dy.astype(dy_ref.dtype)

    # Hutchinson divergence, rewritten so only W1y^T / W2^T are needed:
    #   e^T J e = sum_h (e @ W1y^T)_h * [(e @ W2) * (1 - h^2)]_h
    # e @ W2 == e @ (W2^T)^T  ->  NT matmul via dot_general (no 2nd weight copy).
    e_w2 = lax.dot_general(cast(e), w2T, (((1,), (1,)), ((), ())),
                           preferred_element_type=jnp.float32)       # [Bt, Hp]
    g = e_w2 * (1.0 - h * h)
    div = jnp.sum(ew1 * g, axis=1, keepdims=True)                    # [Bt, 1]
    negdiv_ref[...] = (-div).astype(negdiv_ref.dtype)


# ------------------------------- wrapper ----------------------------------- #
@functools.partial(jax.jit, static_argnames=("mxu_bf16",))
def odefunc_forward(t, y, c, e, padded_params, mxu_bf16=False):
    """Pallas implementation of ODEfunc.forward for the concat-MLP diffeq."""
    B, D = y.shape
    Dc = c.shape[1]
    Dp, Hp = padded_params["w1yT"].shape
    Dcp = padded_params["w1cT"].shape[0]

    # Batch tiling: pad B to sublanes, pick a tile, pad B to a tile multiple.
    Bp = _round_up(B, SUBLANE)
    Bt = min(Bp, MAX_BT)               # weights stay VMEM-resident per tile
    Bp = _round_up(Bp, Bt)
    grid = (Bp // Bt,)

    yp = jnp.pad(y, ((0, Bp - B), (0, Dp - D)))
    ep = jnp.pad(e, ((0, Bp - B), (0, Dp - D)))
    cp = jnp.pad(c, ((0, Bp - B), (0, Dcp - Dc)))
    t_smem = jnp.asarray(t, dtype=jnp.float32).reshape(1)

    kernel = functools.partial(_odefunc_kernel, mxu_bf16=mxu_bf16)

    def act_spec(n):
        return pl.BlockSpec((Bt, n), lambda i: (i, 0))

    def wgt_spec(m, n):
        return pl.BlockSpec((m, n), lambda i: (0, 0))

    dy_p, negdiv_p = pl.pallas_call(
        kernel,
        out_shape=(jax.ShapeDtypeStruct((Bp, Dp), y.dtype),    # dy (padded)
                   jax.ShapeDtypeStruct((Bp, 1), y.dtype)),    # -div
        grid=grid,
        in_specs=[
            pl.BlockSpec(memory_space=pltpu.MemorySpace.SMEM),   # t scalar
            act_spec(Dp),            # y
            act_spec(Dp),            # e
            act_spec(Dcp),           # c
            wgt_spec(Dp, Hp),        # W1y^T
            wgt_spec(Dcp, Hp),       # W1c^T
            wgt_spec(1, Hp),         # w1t
            wgt_spec(1, Hp),         # b1
            wgt_spec(Hp, Dp),        # W2^T
            wgt_spec(1, Dp),         # b2
        ],
        out_specs=[act_spec(Dp),
                   pl.BlockSpec((Bt, 1), lambda i: (i, 0))],
        compiler_params=pltpu.CompilerParams(
            dimension_semantics=("parallel",)),
    )(t_smem, yp, ep, cp,
      padded_params["w1yT"], padded_params["w1cT"], padded_params["w1t"],
      padded_params["b1"], padded_params["w2T"], padded_params["b2"])

    dy = dy_p[:B, :D]
    negdiv = negdiv_p[:B]
    dc = jnp.zeros_like(c)     # third state: zeros_like(c) (done by XLA, not kernel)
    return dy, negdiv, dc


# ----------------------------- params & module ----------------------------- #
def make_params(key, D, Dc, H, dtype=jnp.float32):
    k1, k2, k3, k4, k5, k6 = jax.random.split(key, 6)
    s1 = 1.0 / jnp.sqrt(D + Dc + 1)
    return {
        "w1y": jax.random.normal(k1, (H, D), dtype) * s1,
        "w1c": jax.random.normal(k2, (H, Dc), dtype) * s1,
        "w1t": jax.random.normal(k3, (H,), dtype) * s1,
        "b1":  jax.random.normal(k4, (H,), dtype) * 0.01,
        "w2":  jax.random.normal(k5, (D, H), dtype) * (1.0 / jnp.sqrt(H)),
        "b2":  jax.random.normal(k6, (D,), dtype) * 0.01,
    }


def pad_params_for_kernel(lp, lane=LANE):
    """One-time lane-padding of the weights into the orientations the kernel uses."""
    H, D = lp["w1y"].shape
    Dc = lp["w1c"].shape[1]
    Dp, Dcp, Hp = _round_up(D, lane), _round_up(Dc, lane), _round_up(H, lane)

    def pad2(x, r, c):
        return jnp.pad(x, ((0, r - x.shape[0]), (0, c - x.shape[1])))

    return {
        "w1yT": pad2(lp["w1y"].T, Dp, Hp),               # [Dp, Hp]
        "w1cT": pad2(lp["w1c"].T, Dcp, Hp),              # [Dcp, Hp]
        "w1t":  pad2(lp["w1t"].reshape(1, H), 1, Hp),    # [1, Hp]
        "b1":   pad2(lp["b1"].reshape(1, H), 1, Hp),     # [1, Hp]
        "w2T":  pad2(lp["w2"].T, Hp, Dp),                # [Hp, Dp]
        "b2":   pad2(lp["b2"].reshape(1, D), 1, Dp),     # [1, Dp]
    }


def sample_rademacher_like(key, y):
    return jax.random.randint(key, y.shape, 0, 2).astype(y.dtype) * 2 - 1


class ODEfuncPallas:
    """Mirrors the PyTorch ODEfunc interface (forward(t, states))."""

    def __init__(self, logical_params, mxu_bf16=False):
        self.logical_params = logical_params
        self.padded_params = pad_params_for_kernel(logical_params)
        self.mxu_bf16 = mxu_bf16          # set True on v6e/v7x for bf16 MXU ops
        self._num_evals = 0.0             # host-side bookkeeping only
        self._e = None

    def before_odeint(self, e=None):
        self._e = e
        self._num_evals = 0.0

    def forward(self, t, states, *, rng=None):
        self._num_evals += 1
        y = states[0]
        c = states[2]
        if self._e is None:
            assert rng is not None, "need an rng key to sample the Rademacher probe"
            self._e = sample_rademacher_like(rng, y)
        dy, negdiv, dc = odefunc_forward(t, y, c, self._e, self.padded_params,
                                         mxu_bf16=self.mxu_bf16)
        return (dy, negdiv, dc)


# ------------------------------ reference ---------------------------------- #
def _diffeq_ref(lp, y, c, tt):
    z = (y @ lp["w1y"].T + c @ lp["w1c"].T
         + tt * lp["w1t"].reshape(1, -1) + lp["b1"].reshape(1, -1))
    h = jnp.tanh(z)
    return h @ lp["w2"].T + lp["b2"].reshape(1, -1)


def _forward_ref(t, y, c, e, lp):
    B = y.shape[0]
    tt = jnp.ones((B, 1), y.dtype) * t
    f = lambda yy: _diffeq_ref(lp, yy, c, tt)
    dy, vjp_fn = jax.vjp(f, y)
    (e_dzdx,) = vjp_fn(e)
    div = jnp.sum((e_dzdx * e).reshape(B, -1), axis=1, keepdims=True)
    return dy, -div, jnp.zeros_like(c)


# --------------------------------- main ------------------------------------ #
if __name__ == "__main__":
    B, D, Dc, H = 8, 32, 8, 32
    key = jax.random.PRNGKey(0)
    kp, ky, kc, ke = jax.random.split(key, 4)

    params = make_params(kp, D, Dc, H)
    y = jax.random.normal(ky, (B, D), jnp.float32)
    logp = jnp.zeros((B, 1), jnp.float32)
    c = jax.random.normal(kc, (B, Dc), jnp.float32)
    t = jnp.float32(0.5)

    odefunc = ODEfuncPallas(params)
    odefunc.before_odeint()  # _e sampled (Rademacher) on first eval
    dy, negdiv, dc = odefunc.forward(t, (y, logp, c), rng=ke)
    jax.block_until_ready((dy, negdiv, dc))

    # sanity check against pure-JAX autodiff reference
    dy_r, negdiv_r, dc_r = _forward_ref(t, y, c, odefunc._e, params)
    assert dy.shape == dy_r.shape and negdiv.shape == negdiv_r.shape
    assert jnp.allclose(dy, dy_r, atol=1e-5, rtol=1e-5)
    assert jnp.allclose(negdiv, negdiv_r, atol=1e-4, rtol=1e-4)
    assert jnp.allclose(dc, dc_r)

    print("KERNEL_OK")
</pallas_src>

<mosaic_0001>
module attributes {stable_mosaic.version = 11 : i64} {
  func.func @_odefunc_kernel(%arg0: i32, %arg1: memref<1xf32, #tpu.memory_space<smem>>, %arg2: memref<8x128xf32, #tpu.memory_space<vmem>>, %arg3: memref<8x128xf32, #tpu.memory_space<vmem>>, %arg4: memref<8x128xf32, #tpu.memory_space<vmem>>, %arg5: memref<128x128xf32, #tpu.memory_space<vmem>>, %arg6: memref<128x128xf32, #tpu.memory_space<vmem>>, %arg7: memref<1x128xf32, #tpu.memory_space<vmem>>, %arg8: memref<1x128xf32, #tpu.memory_space<vmem>>, %arg9: memref<128x128xf32, #tpu.memory_space<vmem>>, %arg10: memref<1x128xf32, #tpu.memory_space<vmem>>, %arg11: memref<8x128xf32, #tpu.memory_space<vmem>>, %arg12: memref<8x1xf32, #tpu.memory_space<vmem>>) attributes {dimension_semantics = [#tpu.dimension_semantics<parallel>], iteration_bounds = array<i64: 1>, scalar_prefetch = 0 : i64, scratch_operands = 0 : i64, tpu.core_type = #tpu.core_type<tc>, window_params = [{transform_indices = @transform_0, window_bounds = array<i64: 1>}, {transform_indices = @transform_1, window_bounds = array<i64: 8, 128>}, {transform_indices = @transform_2, window_bounds = array<i64: 8, 128>}, {transform_indices = @transform_3, window_bounds = array<i64: 8, 128>}, {pipeline_mode = #tpu.pipeline_mode<synchronous>, transform_indices = @transform_4, window_bounds = array<i64: 128, 128>}, {pipeline_mode = #tpu.pipeline_mode<synchronous>, transform_indices = @transform_5, window_bounds = array<i64: 128, 128>}, {pipeline_mode = #tpu.pipeline_mode<synchronous>, transform_indices = @transform_6, window_bounds = array<i64: 1, 128>}, {pipeline_mode = #tpu.pipeline_mode<synchronous>, transform_indices = @transform_7, window_bounds = array<i64: 1, 128>}, {pipeline_mode = #tpu.pipeline_mode<synchronous>, transform_indices = @transform_8, window_bounds = array<i64: 128, 128>}, {pipeline_mode = #tpu.pipeline_mode<synchronous>, transform_indices = @transform_9, window_bounds = array<i64: 1, 128>}, {transform_indices = @transform_10, window_bounds = array<i64: 8, 128>}, {transform_indices = @transform_11, window_bounds = array<i64: 8, 1>}]} {
    %c0 = arith.constant 0 : index
    %c0_0 = arith.constant 0 : index
    %0 = vector.load %arg2[%c0, %c0_0] : memref<8x128xf32, #tpu.memory_space<vmem>>, vector<8x128xf32>
    %c0_1 = arith.constant 0 : index
    %c0_2 = arith.constant 0 : index
    %1 = vector.load %arg3[%c0_1, %c0_2] : memref<8x128xf32, #tpu.memory_space<vmem>>, vector<8x128xf32>
    %c0_3 = arith.constant 0 : index
    %c0_4 = arith.constant 0 : index
    %2 = vector.load %arg4[%c0_3, %c0_4] : memref<8x128xf32, #tpu.memory_space<vmem>>, vector<8x128xf32>
    %c0_5 = arith.constant 0 : index
    %3 = memref.load %arg1[%c0_5] : memref<1xf32, #tpu.memory_space<smem>>
    %c0_6 = arith.constant 0 : index
    %c0_7 = arith.constant 0 : index
    %4 = vector.load %arg5[%c0_6, %c0_7] : memref<128x128xf32, #tpu.memory_space<vmem>>, vector<128x128xf32>
    %c0_8 = arith.constant 0 : index
    %c0_9 = arith.constant 0 : index
    %5 = vector.load %arg9[%c0_8, %c0_9] : memref<128x128xf32, #tpu.memory_space<vmem>>, vector<128x128xf32>
    %c0_10 = arith.constant 0 : index
    %c0_11 = arith.constant 0 : index
    %6 = vector.load %arg7[%c0_10, %c0_11] : memref<1x128xf32, #tpu.memory_space<vmem>>, vector<1x128xf32>
    %7 = vector.broadcast %3 : f32 to vector<1x128xf32>
    %8 = arith.mulf %7, %6 : vector<1x128xf32>
    %c0_12 = arith.constant 0 : index
    %c0_13 = arith.constant 0 : index
    %9 = vector.load %arg8[%c0_12, %c0_13] : memref<1x128xf32, #tpu.memory_space<vmem>>, vector<1x128xf32>
    %10 = arith.addf %8, %9 : vector<1x128xf32>
    %11 = tpu.concatenate %0, %1 in 0 : vector<8x128xf32>, vector<8x128xf32> -> vector<16x128xf32>
    %cst = arith.constant dense<0.000000e+00> : vector<16x128xf32>
    %12 = tpu.matmul %11, %4, %cst {dimension_numbers = #tpu.dot_dimension_numbers<[1], [0], [0], [1], [0, 0, 1, 1], [], []>} : vector<16x128xf32>, vector<128x128xf32>, vector<16x128xf32> -> vector<16x128xf32>
    %13 = vector.extract_strided_slice %12 {offsets = [0, 0], sizes = [8, 128], strides = [1, 1]} : vector<16x128xf32> to vector<8x128xf32>
    %14 = vector.extract_strided_slice %12 {offsets = [8, 0], sizes = [8, 128], strides = [1, 1]} : vector<16x128xf32> to vector<8x128xf32>
    %c0_14 = arith.constant 0 : index
    %c0_15 = arith.constant 0 : index
    %15 = vector.load %arg6[%c0_14, %c0_15] : memref<128x128xf32, #tpu.memory_space<vmem>>, vector<128x128xf32>
    %cst_16 = arith.constant dense<0.000000e+00> : vector<8x128xf32>
    %16 = tpu.matmul %2, %15, %cst_16 {dimension_numbers = #tpu.dot_dimension_numbers<[1], [0], [0], [1], [0, 0, 1, 1], [], []>} : vector<8x128xf32>, vector<128x128xf32>, vector<8x128xf32> -> vector<8x128xf32>
    %17 = arith.addf %13, %16 : vector<8x128xf32>
    %18 = vector.broadcast %10 : vector<1x128xf32> to vector<8x128xf32>
    %19 = arith.addf %17, %18 : vector<8x128xf32>
    %20 = math.tanh %19 : vector<8x128xf32>
    %cst_17 = arith.constant dense<0.000000e+00> : vector<8x128xf32>
    %21 = tpu.matmul %20, %5, %cst_17 {dimension_numbers = #tpu.dot_dimension_numbers<[1], [0], [0], [1], [0, 0, 1, 1], [], []>} : vector<8x128xf32>, vector<128x128xf32>, vector<8x128xf32> -> vector<8x128xf32>
    %c0_18 = arith.constant 0 : index
    %c0_19 = arith.constant 0 : index
    %22 = vector.load %arg10[%c0_18, %c0_19] : memref<1x128xf32, #tpu.memory_space<vmem>>, vector<1x128xf32>
    %23 = vector.broadcast %22 : vector<1x128xf32> to vector<8x128xf32>
    %24 = arith.addf %21, %23 : vector<8x128xf32>
    %c0_20 = arith.constant 0 : index
    %c0_21 = arith.constant 0 : index
    %25 = vector.load %arg11[%c0_20, %c0_21] : memref<8x128xf32, #tpu.memory_space<vmem>>, vector<8x128xf32>
    tpu.vector_store %arg11[%c0_20, %c0_21], %24 {strides = array<i32>} : memref<8x128xf32, #tpu.memory_space<vmem>>, vector<8x128xf32>,
    %cst_22 = arith.constant dense<0.000000e+00> : vector<8x128xf32>
    %26 = tpu.matmul %1, %5, %cst_22 {dimension_numbers = #tpu.dot_dimension_numbers<[1], [1], [0], [0], [0, 0, 1, 0], [], []>} : vector<8x128xf32>, vector<128x128xf32>, vector<8x128xf32> -> vector<8x128xf32>
    %27 = arith.mulf %20, %20 : vector<8x128xf32>
    %cst_23 = arith.constant 1.000000e+00 : f32
    %28 = vector.broadcast %cst_23 : f32 to vector<8x128xf32>
    %29 = arith.subf %28, %27 : vector<8x128xf32>
    %30 = arith.mulf %26, %29 : vector<8x128xf32>
    %31 = arith.mulf %14, %30 : vector<8x128xf32>
    %cst_24 = arith.constant dense<0.000000e+00> : vector<8xf32>
    %32 = vector.multi_reduction <add>, %31, %cst_24 [1] : vector<8x128xf32> to vector<8xf32>
    %33 = vector.shape_cast %32 : vector<8xf32> to vector<8x1xf32>
    %cst_25 = arith.constant 0.000000e+00 : f32
    %34 = vector.broadcast %cst_25 : f32 to vector<8x1xf32>
    %35 = arith.subf %34, %33 : vector<8x1xf32>
    %c0_26 = arith.constant 0 : index
    %c0_27 = arith.constant 0 : index
    %36 = vector.load %arg12[%c0_26, %c0_27] : memref<8x1xf32, #tpu.memory_space<vmem>>, vector<8x1xf32>
    tpu.vector_store %arg12[%c0_26, %c0_27], %35 {strides = array<i32>} : memref<8x1xf32, #tpu.memory_space<vmem>>, vector<8x1xf32>,
    return
  }
  func.func @transform_0(%arg0: i32) -> i32 {
    %c0_i32 = arith.constant 0 : i32
    %c0_i32_0 = arith.constant 0 : i32
    return %c0_i32 : i32
  }
  func.func @transform_1(%arg0: i32) -> (i32, i32) {
    %c0_i32 = arith.constant 0 : i32
    %c0_i32_0 = arith.constant 0 : i32
    return %arg0, %c0_i32 : i32, i32
  }
  func.func @transform_2(%arg0: i32) -> (i32, i32) {
    %c0_i32 = arith.constant 0 : i32
    %c0_i32_0 = arith.constant 0 : i32
    return %arg0, %c0_i32 : i32, i32
  }
  func.func @transform_3(%arg0: i32) -> (i32, i32) {
    %c0_i32 = arith.constant 0 : i32
    %c0_i32_0 = arith.constant 0 : i32
    return %arg0, %c0_i32 : i32, i32
  }
  func.func @transform_4(%arg0: i32) -> (i32, i32) {
    %c0_i32 = arith.constant 0 : i32
    %c0_i32_0 = arith.constant 0 : i32
    %c0_i32_1 = arith.constant 0 : i32
    return %c0_i32, %c0_i32_0 : i32, i32
  }
  func.func @transform_5(%arg0: i32) -> (i32, i32) {
    %c0_i32 = arith.constant 0 : i32
    %c0_i32_0 = arith.constant 0 : i32
    %c0_i32_1 = arith.constant 0 : i32
    return %c0_i32, %c0_i32_0 : i32, i32
  }
  func.func @transform_6(%arg0: i32) -> (i32, i32) {
    %c0_i32 = arith.constant 0 : i32
    %c0_i32_0 = arith.constant 0 : i32
    %c0_i32_1 = arith.constant 0 : i32
    return %c0_i32, %c0_i32_0 : i32, i32
  }
  func.func @transform_7(%arg0: i32) -> (i32, i32) {
    %c0_i32 = arith.constant 0 : i32
    %c0_i32_0 = arith.constant 0 : i32
    %c0_i32_1 = arith.constant 0 : i32
    return %c0_i32, %c0_i32_0 : i32, i32
  }
  func.func @transform_8(%arg0: i32) -> (i32, i32) {
    %c0_i32 = arith.constant 0 : i32
    %c0_i32_0 = arith.constant 0 : i32
    %c0_i32_1 = arith.constant 0 : i32
    return %c0_i32, %c0_i32_0 : i32, i32
  }
  func.func @transform_9(%arg0: i32) -> (i32, i32) {
    %c0_i32 = arith.constant 0 : i32
    %c0_i32_0 = arith.constant 0 : i32
    %c0_i32_1 = arith.constant 0 : i32
    return %c0_i32, %c0_i32_0 : i32, i32
  }
  func.func @transform_10(%arg0: i32) -> (i32, i32) {
    %c0_i32 = arith.constant 0 : i32
    %c0_i32_0 = arith.constant 0 : i32
    return %arg0, %c0_i32 : i32, i32
  }
  func.func @transform_11(%arg0: i32) -> (i32, i32) {
    %c0_i32 = arith.constant 0 : i32
    %c0_i32_0 = arith.constant 0 : i32
    return %arg0, %c0_i32 : i32, i32
  }
}

</mosaic_0001>

<bundles_post_ra>
// kernel: odefunc_forward.1
= control target key start
LH: loop header
LB: loop body
LE: loop exit
PB: predicated region body
PF: predicated region fallthrough
CT: control target
= control target key end

     0   :  { %18 = vsyncpa [#allocation4], 0  ;;  %s1074_s0 = inlined_call_operand.<no memory space> [shape: f32[1], index: 0, kind: input, shape index: {}]   ;;  %s1075_s1 = inlined_call_operand.vmem [shape: f32[8,128], index: 1, kind: input, shape index: {}]   ;;  %s1076_s2 = inlined_call_operand.vmem [shape: f32[8,128], index: 2, kind: input, shape index: {}]   ;;  %s1077_s3 = inlined_call_operand.vmem [shape: f32[8,128], index: 3, kind: input, shape index: {}]   ;;  %s1078_s4 = inlined_call_operand.hbm [shape: f32[128,128], index: 4, kind: input, shape index: {}]   ;;  %s1079_s5 = inlined_call_operand.hbm [shape: f32[128,128], index: 5, kind: input, shape index: {}]   ;;  %s1080_s6 = inlined_call_operand.vmem [shape: f32[1,128], index: 6, kind: input, shape index: {}]   ;;  %s1081_s7 = inlined_call_operand.vmem [shape: f32[1,128], index: 7, kind: input, shape index: {}]   ;;  %s1082_s8 = inlined_call_operand.hbm [shape: f32[128,128], index: 8, kind: input, shape index: {}]   ;;  %s1083_s9 = inlined_call_operand.vmem [shape: f32[1,128], index: 9, kind: input, shape index: {}]   ;;  %s1084_s10 = inlined_call_operand.hbm [shape: f32[8,128], index: 10, kind: output, shape index: {0}]   ;;  %s1085_s11 = inlined_call_operand.vmem [shape: f32[8,1], index: 11, kind: output, shape index: {1}]  }
   0x1   :  { %19 = vsyncpa [#allocation7], 0 }
   0x2   :  { %20 = vsyncpa [#allocation5], 0  ;;  %s887_s17 = smov [#allocation6]   ;;  %s888_s19 = smov [#allocation3]  }
   0x3   :  { %s46_s18 = sshll.u32 %s887_s17, 4  ;;  %s34_s20 = sshll.u32 %s888_s19, 4  ;;  %s47_s18 = int_to_ptr.vmem [resolvable:$true] %s46_s18  ;;  %s956_s20 = int_to_ptr.vmem [resolvable:$true] %s34_s20 }
   0x4   :  { %s793_s23 = scalar_lea.hbm %s1079_s5, 2048 }
   0x5   :  { %p794_p0 = scmp.ne.s32.totalorder %s1079_s5, %s793_s23  ;;  %p797_p1 = scmp.lt.u32.totalorder %s793_s23, %s1079_s5 }
   0x7   :  { %p799_p2 = pnand %p797_p1, %p794_p0 }
   0x9   :  { %802 = shalt.err (!%p799_p2)
}
   0xa   :  { %s803_s28 = scalar_lea.vmem %s47_s18, 2048  ;;  %p808_p4 = scmp.lt.s32.totalorder %s47_s18, %s47_s18 }
   0xb   :  { %p804_p3 = scmp.ne.s32.totalorder %s47_s18, %s803_s28  ;;  %p809_p5 = scmp.lt.s32.totalorder %s803_s28, %s803_s28 }
   0xd   :  { %p810_p6 = por %p809_p5, %p808_p4 }
   0xf   :  { %p811_p7 = pnand %p810_p6, %p804_p3 }
  0x11   :  { %814 = shalt.err (!%p811_p7)
}
  0x12   :  { %s889_s29 = smov 128   ;;  %s890_s30 = smov 8  }
  0x13   :  { %52 = dma.hbm_to_vmem [thread:$0]  %s1079_s5, 2048, %s47_s18, [#allocation7], %s889_s29, %s889_s29, %s890_s30  }
  0x14   :  { %s815_s16 = scalar_lea.hbm %s1078_s4, 2048 }
  0x15   :  { %p816_p8 = scmp.ne.s32.totalorder %s1078_s4, %s815_s16  ;;  %p819_p9 = scmp.lt.u32.totalorder %s815_s16, %s1078_s4 }
  0x17   :  { %p821_p10 = pnand %p819_p9, %p816_p8 }
  0x19   :  { %824 = shalt.err (!%p821_p10)
}
  0x1a   :  { %s825_s23 = scalar_lea.vmem %s956_s20, 2048  ;;  %p830_p12 = scmp.lt.s32.totalorder %s956_s20, %s956_s20 }
  0x1b   :  { %p826_p11 = scmp.ne.s32.totalorder %s956_s20, %s825_s23  ;;  %p831_p13 = scmp.lt.s32.totalorder %s825_s23, %s825_s23 }
  0x1d   :  { %p832_p0 = por %p831_p13, %p830_p12 }
  0x1f   :  { %p833_p1 = pnand %p832_p0, %p826_p11 }
  0x21   :  { %836 = shalt.err (!%p833_p1)
}
  0x22   :  { %40 = dma.hbm_to_vmem [thread:$0]  %s1078_s4, 2048, %s956_s20, [#allocation4], %s889_s29, %s889_s29, %s890_s30  }
  0x23   :  { %s891_s24 = smov [#allocation8]   ;;  %s837_s28 = scalar_lea.hbm %s1082_s8, 2048 }
  0x24   :  { %s62_s25 = sshll.u32 %s891_s24, 4  ;;  %p838_p2 = scmp.ne.s32.totalorder %s1082_s8, %s837_s28  ;;  %s63_s25 = int_to_ptr.vmem [resolvable:$true] %s62_s25 }
  0x25   :  { %p841_p3 = scmp.lt.u32.totalorder %s837_s28, %s1082_s8 }
  0x27   :  { %p843_p4 = pnand %p841_p3, %p838_p2 }
  0x29   :  { %846 = shalt.err (!%p843_p4)
}
  0x2a   :  { %s847_s16 = scalar_lea.vmem %s63_s25, 2048  ;;  %p852_p6 = scmp.lt.s32.totalorder %s63_s25, %s63_s25 }
  0x2b   :  { %p848_p5 = scmp.ne.s32.totalorder %s63_s25, %s847_s16  ;;  %p853_p7 = scmp.lt.s32.totalorder %s847_s16, %s847_s16 }
  0x2d   :  { %p854_p8 = por %p853_p7, %p852_p6 }
  0x2f   :  { %p855_p9 = pnand %p854_p8, %p848_p5 }
  0x31   :  { %858 = shalt.err (!%p855_p9)
}
  0x32   :  { %68 = dma.hbm_to_vmem [thread:$0]  %s1082_s8, 2048, %s63_s25, [#allocation7], %s889_s29, %s889_s29, %s890_s30  }
  0x33   :  { %881 = dma.done.wait [#allocation4], 2048  }
  0x34   :  { %882 = vsyncadd [#allocation4], 4294965248 }
  0x35   :  { %883 = dma.done.wait [#allocation7], 4096  }
  0x36   :  { %884 = vsyncadd [#allocation7], 4294963200  ;;  %v892_v0 = vmov 0.0|0.0   ;;  %vm893_vm0 = vmmov 0   ;;  %v894_v1 = vmov 0.0   ;;  %v84_v2 = vld [vmem:[#allocation3] sm:$0xff] }
  0x37   :  { %710 = vmatprep.subr.bf16.mxu1 %v892_v0  ;;  %605 = vmatprep.mubr.msk.f32.mxu1 %vm893_vm0, %v894_v1  ;;  %v85_v3 = vld [vmem:[#allocation3 + $0x8] sm:$0xff]  ;;  %v196_v4 = vld [vmem:[#allocation6] sm:$0xff]  ;;  %v86_v7 = vld [vmem:[#allocation3 + $0x10] sm:$0xff]  ;;  %vm446_vm1 = vcmask 7168   ;;  %s895_s24 = smov [#allocation9]  }
  0x38   :  { %v678_v5 = vpack.c.bf16 %v85_v3, %v84_v2  ;;  %v197_v6 = vld [vmem:[#allocation6 + $0x8] sm:$0xff]  ;;  %v87_v8 = vld [vmem:[#allocation3 + $0x18] sm:$0xff]  ;;  %v198_v11 = vld [vmem:[#allocation6 + $0x10] sm:$0xff]  ;;  %s454_s25 = sshll.u32 %s895_s24, 4  ;;  %s455_s25 = int_to_ptr.vmem [resolvable:$true] %s454_s25 }
  0x39   :  { %v711_v9 = vpack.c.bf16 %v197_v6, %v196_v4  ;;  %v682_v10 = vpack.c.bf16 %v87_v8, %v86_v7  ;;  %v199_v12 = vld [vmem:[#allocation6 + $0x18] sm:$0xff]  ;;  %v88_v13 = vld [vmem:[#allocation3 + $0x20] sm:$0xff]  ;;  %v89_v14 = vld [vmem:[#allocation3 + $0x28] sm:$0xff]  ;;  %s859_s26 = scalar_lea.vmem %s455_s25, 128  ;;  %p864_p11 = scmp.lt.s32.totalorder %s455_s25, %s455_s25 }
  0x3a   :  { %679 = vmatprep.subr.bf16.mxu0 %v678_v5  ;;  %v714_v15 = vpack.c.bf16 %v199_v12, %v198_v11  ;;  %v686_v16 = vpack.c.bf16 %v89_v14, %v88_v13  ;;  %v200_v17 = vld [vmem:[#allocation6 + $0x20] sm:$0xff]  ;;  %v201_v18 = vld [vmem:[#allocation6 + $0x28] sm:$0xff]  ;;  %v90_v19 = vld [vmem:[#allocation3 + $0x30] sm:$0xff]  ;;  %v284_v14 = vlaneseq  ;;  %p860_p10 = scmp.ne.s32.totalorder %s455_s25, %s859_s26  ;;  %p865_p12 = scmp.lt.s32.totalorder %s859_s26, %s859_s26 }
  0x3b   :  { %712 = vmatpush3.bf16.msra.mxu1 %v711_v9  ;;  %681 = vmatpush3.bf16.msra.mxu0 %v678_v5  ;;  %v91_v20 = vld [vmem:[#allocation3 + $0x38] sm:$0xff]  ;;  %v717_v21 = vpack.c.bf16 %v201_v18, %v200_v17  ;;  %v202_v23 = vld [vmem:[#allocation6 + $0x30] sm:$0xff]  ;;  %v92_v25 = vld [vmem:[#allocation3 + $0x40] sm:$0xff] }
  0x3c   :  { %713 = vmatprep.subr.bf16.mxu1 %v892_v0  ;;  %683 = vmatprep.subr.bf16.mxu0 %v682_v10  ;;  %v690_v22 = vpack.c.bf16 %v91_v20, %v90_v19  ;;  %v203_v24 = vld [vmem:[#allocation6 + $0x38] sm:$0xff]  ;;  %v93_v26 = vld [vmem:[#allocation3 + $0x48] sm:$0xff]  ;;  %v80_v27 = vld [vmem:[%s1075_s1] sm:$0xff]  ;;  %v285_v18 = vshrl.u32 %v284_v14, 7  ;;  %p866_p13 = por %p865_p12, %p864_p11 }
  0x3d   :  { %570 = vmatprep.mubr.f32.mxu0 %v80_v27  ;;  %v720_v28 = vpack.c.bf16 %v203_v24, %v202_v23  ;;  %v694_v29 = vpack.c.bf16 %v93_v26, %v92_v25  ;;  %v204_v30 = vld [vmem:[#allocation6 + $0x40] sm:$0xff]  ;;  %v205_v31 = vld [vmem:[#allocation6 + $0x48] sm:$0xff]  ;;  %v94_v32 = vld [vmem:[#allocation3 + $0x50] sm:$0xff] }
  0x3e   :  { %v95_v33 = vld [vmem:[#allocation3 + $0x58] sm:$0xff]  ;;  %v723_v34 = vpack.c.bf16 %v205_v31, %v204_v30  ;;  %v206_v36 = vld [vmem:[#allocation6 + $0x50] sm:$0xff]  ;;  %v96_v38 = vld [vmem:[#allocation3 + $0x60] sm:$0xff]  ;;  %p867_p0 = pnand %p866_p13, %p860_p10 }
  0x3f   :  { %715 = vmatpush3.bf16.msra.mxu1 %v714_v15  ;;  %685 = vmatpush3.bf16.msra.mxu0 %v682_v10  ;;  %v698_v35 = vpack.c.bf16 %v95_v33, %v94_v32  ;;  %v207_v37 = vld [vmem:[#allocation6 + $0x58] sm:$0xff]  ;;  %v97_v39 = vld [vmem:[#allocation3 + $0x68] sm:$0xff]  ;;  %v208_v42 = vld [vmem:[#allocation6 + $0x60] sm:$0xff] }
  0x40   :  { %716 = vmatprep.subr.bf16.mxu1 %v892_v0  ;;  %687 = vmatprep.subr.bf16.mxu0 %v686_v16  ;;  %v726_v40 = vpack.c.bf16 %v207_v37, %v206_v36  ;;  %v702_v41 = vpack.c.bf16 %v97_v39, %v96_v38  ;;  %v209_v43 = vld [vmem:[#allocation6 + $0x68] sm:$0xff]  ;;  %v98_v44 = vld [vmem:[#allocation3 + $0x70] sm:$0xff]  ;;  %v99_v45 = vld [vmem:[#allocation3 + $0x78] sm:$0xff] }
  0x41   :  { %v729_v46 = vpack.c.bf16 %v209_v43, %v208_v42  ;;  %v706_v47 = vpack.c.bf16 %v99_v45, %v98_v44  ;;  %v210_v48 = vld [vmem:[#allocation6 + $0x70] sm:$0xff]  ;;  %v211_v49 = vld [vmem:[#allocation6 + $0x78] sm:$0xff]  ;;  %v100_v51 = vld [vmem:[#allocation8] sm:$0xff] }
  0x42   :  { %v732_v50 = vpack.c.bf16 %v211_v49, %v210_v48  ;;  %v101_v52 = vld [vmem:[#allocation8 + $0x8] sm:$0xff]  ;;  %v81_v53 = vld [vmem:[%s1076_s2] sm:$0xff]  ;;  %v102_v56 = vld [vmem:[#allocation8 + $0x10] sm:$0xff] }
  0x43   :  { %718 = vmatpush3.bf16.msra.mxu1 %v717_v21  ;;  %689 = vmatpush3.bf16.msra.mxu0 %v686_v16  ;;  %v82_v54 = vld [vmem:[%s1077_s3] sm:$0xff]  ;;  %v735_v55 = vpack.c.bf16 %v101_v52, %v100_v51  ;;  %v103_v57 = vld [vmem:[#allocation8 + $0x18] sm:$0xff]  ;;  %v105_v60 = vld [vmem:[#allocation8 + $0x28] sm:$0xff]  ;;  %v117_v16 = vstv %s1074_s0  ;;  %v286_v21 = vsub.s32 0, %v285_v18 }
  0x44   :  { %719 = vmatprep.subr.bf16.mxu1 %v892_v0  ;;  %691 = vmatprep.subr.bf16.mxu0 %v690_v22  ;;  %v738_v58 = vpack.c.bf16 %v103_v57, %v102_v56  ;;  %v104_v59 = vld [vmem:[#allocation8 + $0x20] sm:$0xff]  ;;  %v106_v62 = vld [vmem:[#allocation8 + $0x30] sm:$0xff]  ;;  %v107_v63 = vld [vmem:[#allocation8 + $0x38] sm:$0xff] }
  0x45   :  { %v741_v61 = vpack.c.bf16 %v105_v60, %v104_v59  ;;  %v744_v2 = vpack.c.bf16 %v107_v63, %v106_v62  ;;  %v108_v3 = vld [vmem:[#allocation8 + $0x40] sm:$0xff]  ;;  %v109_v4 = vld [vmem:[#allocation8 + $0x48] sm:$0xff]  ;;  %v110_v5 = vld [vmem:[#allocation8 + $0x50] sm:$0xff] }
  0x46   :  { %v111_v6 = vld [vmem:[#allocation8 + $0x58] sm:$0xff]  ;;  %v112_v8 = vld [vmem:[#allocation8 + $0x60] sm:$0xff]  ;;  %v113_v9 = vld [vmem:[#allocation8 + $0x68] sm:$0xff] }
  0x47   :  { %721 = vmatpush3.bf16.msra.mxu1 %v720_v28  ;;  %693 = vmatpush3.bf16.msra.mxu0 %v690_v22  ;;  %v750_v7 = vpack.c.bf16 %v111_v6, %v110_v5  ;;  %v753_v10 = vpack.c.bf16 %v113_v9, %v112_v8  ;;  %v114_v11 = vld [vmem:[#allocation8 + $0x70] sm:$0xff]  ;;  %v115_v12 = vld [vmem:[#allocation8 + $0x78] sm:$0xff]  ;;  %v116_v15 = vld [vmem:[%s1080_s6] sm:$0x1] }
  0x48   :  { %722 = vmatprep.subr.bf16.mxu1 %v892_v0  ;;  %695 = vmatprep.subr.bf16.mxu0 %v694_v29  ;;  %v756_v13 = vpack.c.bf16 %v115_v12, %v114_v11  ;;  %v118_v17 = vmul.f32 %v117_v16, %v116_v15  ;;  %v119_v19 = vld [vmem:[%s1081_s7] sm:$0x1] }
  0x49   :  { %v468_v37 = vld [vmem:[%s1083_s9] ss:$0 sm:$0xff] }
  0x4a   :  { %v120_v20 = vadd.f32 %v119_v19, %v118_v17 }
  0x4b   :  { %724 = vmatpush3.bf16.msra.mxu1 %v723_v34  ;;  %697 = vmatpush3.bf16.msra.mxu0 %v694_v29 }
  0x4c   :  { %725 = vmatprep.subr.bf16.mxu1 %v892_v0  ;;  %699 = vmatprep.subr.bf16.mxu0 %v698_v35  ;;  %v287_v23 = vrot.slane %v120_v20, %v286_v21 }
  0x4f   :  { %727 = vmatpush3.bf16.msra.mxu1 %v726_v40  ;;  %701 = vmatpush3.bf16.msra.mxu0 %v698_v35 }
  0x50   :  { %728 = vmatprep.subr.bf16.mxu1 %v892_v0  ;;  %703 = vmatprep.subr.bf16.mxu0 %v702_v41 }
  0x53   :  { %730 = vmatpush3.bf16.msra.mxu1 %v729_v46  ;;  %705 = vmatpush3.bf16.msra.mxu0 %v702_v41 }
  0x54   :  { %731 = vmatprep.subr.bf16.mxu1 %v892_v0  ;;  %707 = vmatprep.subr.bf16.mxu0 %v706_v47 }
  0x57   :  { %733 = vmatpush3.bf16.msra.mxu1 %v732_v50  ;;  %709 = vmatpush3.bf16.msra.mxu0 %v706_v47 }
  0x58   :  { %758 = vmatprep.subr.bf16.mxu1 %v892_v0  ;;  %734 = vmatprep.subr.bf16.mxu0 %v892_v0 }
  0x5a   :  { %571 = vmatmul.mubr.f32.vlgmr.msra.gmra.mrb[0].mxu0 %v81_v53  ;;  %606 = vmatmul.mubr.f32.vlgmr.msra.gmra.mrb[0].mxu1 %v82_v54 }
  0x5b   :  { %675 = vmatprep.mubr.msk.f32.mxu1 %vm893_vm0, %v894_v1  ;;  %736 = vmatpush3.bf16.msra.mxu0 %v735_v55 }
  0x5c   :  { %737 = vmatprep.subr.bf16.mxu0 %v892_v0  ;;  %640 = vmatprep.mubr.msk.f32.mxu0 %vm893_vm0, %v894_v1  ;;  %v747_v1 = vpack.c.bf16 %v109_v4, %v108_v3 }
  0x5f   :  { %739 = vmatpush3.bf16.msra.mxu0 %v738_v58 }
  0x60   :  { %760 = vmatpush3.bf16.xpose.msra.mxu1 %v735_v55  ;;  %740 = vmatprep.subr.bf16.mxu0 %v892_v0 }
  0x61   :  { %761 = vmatprep.subr.bf16.mxu1 %v892_v0 }
  0x63   :  { %742 = vmatpush3.bf16.msra.mxu0 %v741_v61 }
  0x64   :  { %743 = vmatprep.subr.bf16.mxu0 %v892_v0 }
  0x67   :  { %745 = vmatpush3.bf16.msra.mxu0 %v744_v2 }
  0x68   :  { %763 = vmatpush3.bf16.xpose.msra.mxu1 %v738_v58  ;;  %746 = vmatprep.subr.bf16.mxu0 %v892_v0 }
  0x69   :  { %764 = vmatprep.subr.bf16.mxu1 %v892_v0 }
  0x6b   :  { %748 = vmatpush3.bf16.msra.mxu0 %v747_v1 }
  0x6c   :  { %749 = vmatprep.subr.bf16.mxu0 %v892_v0 }
  0x6f   :  { %751 = vmatpush3.bf16.msra.mxu0 %v750_v7 }
  0x70   :  { %766 = vmatpush3.bf16.xpose.msra.mxu1 %v741_v61  ;;  %752 = vmatprep.subr.bf16.mxu0 %v892_v0 }
  0x71   :  { %767 = vmatprep.subr.bf16.mxu1 %v892_v0 }
  0x73   :  { %754 = vmatpush3.bf16.msra.mxu0 %v753_v10 }
  0x74   :  { %755 = vmatprep.subr.bf16.mxu0 %v892_v0 }
  0x77   :  { %757 = vmatpush3.bf16.msra.mxu0 %v756_v13 }
  0x78   :  { %769 = vmatpush3.bf16.xpose.msra.mxu1 %v744_v2 }
  0x79   :  { %770 = vmatprep.subr.bf16.mxu1 %v892_v0 }
  0x80   :  { %772 = vmatpush3.bf16.xpose.msra.mxu1 %v747_v1 }
  0x81   :  { %773 = vmatprep.subr.bf16.mxu1 %v892_v0 }
  0x88   :  { %775 = vmatpush3.bf16.xpose.msra.mxu1 %v750_v7 }
  0x89   :  { %776 = vmatprep.subr.bf16.mxu1 %v892_v0 }
  0x90   :  { %778 = vmatpush3.bf16.xpose.msra.mxu1 %v753_v10 }
  0x91   :  { %779 = vmatprep.subr.bf16.mxu1 %v892_v0 }
  0x98   :  { %781 = vmatpush3.bf16.xpose.msra.mxu1 %v756_v13 }
  0x9f   :  { %676 = vmatmul.mubr.f32.vlgmr.msra.gmra.mrb[2].mxu1 %v81_v53 }
 0x12d   :  { %v572_v0 = vpop.f32.mrb[0].mxu0  ;;  %v278_v22 = vpop.f32.mrb[0].mxu1 }
 0x12e   :  { %v187_v24 = vpop.f32.mrb[1].mxu0  ;;  %v607_v25 = vpop.f32.mrb[1].mxu1 }
 0x12f   :  { %v282_v26 = vadd.f32 %v278_v22, %v187_v24 }
 0x131   :  { %v289_v27 = vadd.f32 %v287_v23, %v282_v26 }
 0x133   :  { %791 = vtanh.f32 %v289_v27 }
 0x13d   :  { %v792_v28 = vpop.eup %791 }
 0x13e   :  { %641 = vmatmul.mubr.f32.vlgmr.msra.gmra.mrb[2].mxu0 %v792_v28  ;;  %v439_v29 = vmul.f32 %v792_v28, %v792_v28 }
 0x140   :  { %v440_v30 = vsub.f32 1.0, %v439_v29 }
 0x172   :  { %v435_v31 = vpop.f32.mrb[2].mxu1 }
 0x173   :  { %v441_v32 = vmul.f32 %v440_v30, %v435_v31  ;;  %v677_v33 = vpop.f32.mrb[3].mxu1 }
 0x175   :  { %v442_v34 = vmul.f32 %v572_v0, %v441_v32 }
 0x177   :  { %443 = vadd.xlane.f32.xlu0 %v442_v34 }
 0x204   :  { %v444_v35 = vpop.xlane.xlu0 %443 }
 0x205   :  { %v445_v36 = vsub.f32 0.0, %v444_v35 }
 0x207   :  { %447 = vst.msk [vmem:[%s1085_s11] sm:$0xff] %vm446_vm1, %v445_v36 }
 0x211   :  { %v364_v38 = vpop.f32.mrb[2].mxu0 }
 0x212   :  { %v365_v39 = vadd.f32 %v468_v37, %v364_v38  ;;  %v642_v40 = vpop.f32.mrb[3].mxu0 }
 0x214   :  { %368 = vst [vmem:[#allocation9] sm:$0xff] %v365_v39 }
 0x215   :  { %870 = shalt.err (!%p867_p0)
}
 0x216   :  { %s871_s28 = scalar_lea.hbm %s1084_s10, 128 }
 0x217   :  { %p872_p1 = scmp.ne.s32.totalorder %s1084_s10, %s871_s28  ;;  %p875_p2 = scmp.lt.u32.totalorder %s871_s28, %s1084_s10 }
 0x219   :  { %p877_p3 = pnand %p875_p2, %p872_p1 }
 0x21b   :  { %880 = shalt.err (!%p877_p3)
}
 0x21c   :  { %457 = dma.vmem_to_hbm [thread:$0]  %s455_s25, 128, %s1084_s10, [#allocation5]  }
 0x21d   :  { %885 = dma.done.wait [#allocation5], 128  }
 0x21e   :  { %886 = vsyncadd [#allocation5], 4294967168 }
 0x21f   :  { %465 = vsyncpa [#allocation4], 1 }
 0x220   :  { %466 = vsyncpa [#allocation7], 1 }
 0x221   :  { %467 = vsyncpa [#allocation5], 1 }

</bundles_post_ra>
